<compile_context>
chip_gen: v6e
topology: v6e:2x2x1
jax: 0.10.0
libtpu: 0.0.40
codegen_flags: <defaults>
</compile_context>

<pallas_src>
import functools

import jax
import jax.numpy as jnp
from jax.experimental import pallas as pl
from jax.experimental.pallas import tpu as pltpu


def _round_up(n, m):
    return ((n + m - 1) // m) * m


def _fused_mlp_kernel(n_layers, *refs):
    """refs = (x_ref, w0_ref, b0_ref, ..., w{L-1}_ref, b{L-1}_ref, o_ref)."""
    x_ref = refs[0]
    o_ref = refs[-1]
    h = x_ref[...].astype(jnp.float32)
    for i in range(n_layers):
        w_ref = refs[1 + 2 * i]
        b_ref = refs[2 + 2 * i]
        # MXU matmul with f32 accumulation; (1, N) bias broadcasts over rows.
        # Intermediates stay as local values (VMEM/vregs), never hit HBM.
        h = jnp.dot(h, w_ref[...], preferred_element_type=jnp.float32) + b_ref[...]
    o_ref[...] = h.astype(o_ref.dtype)


def fused_mlp(x, weights, biases):
    """Whole MLP in a single gridless pallas_call (all operands fit in VMEM).

    x: (M, D) f32. weights[i]: (in_i, out_i) f32, biases[i]: (1, out_i) f32.
    Returns (M, weights[-1].shape[1]).  The caller is expected to have padded
    the last layer's output dim to a multiple of 128 for a lane-dense store.
    """
    M = x.shape[0]
    n_layers = len(weights)
    n_out = weights[-1].shape[1]
    args = [x]
    for w, b in zip(weights, biases):
        args.append(w)
        args.append(b)
    vmem_spec = pl.BlockSpec(memory_space=pltpu.MemorySpace.VMEM)
    return pl.pallas_call(
        functools.partial(_fused_mlp_kernel, n_layers),
        out_shape=jax.ShapeDtypeStruct((M, n_out), x.dtype),
        in_specs=[vmem_spec] * len(args),
        out_specs=vmem_spec,
    )(*args)


class PallasModel:
    """JAX/Pallas port of SameCompanySameSignal Linear Model (forecast tasks)."""

    def __init__(self, *, task_name, d_model, hidden_sizes, pred_len, key):
        self.task_name = task_name
        self.hidden_sizes = list(hidden_sizes)
        self.pred_len = pred_len

        # Unpadded parameters (reference semantics, matches nn.Linear stack).
        self.weights = []
        self.biases = []
        prev = d_model
        sizes = list(hidden_sizes) + [pred_len]
        for h in sizes:
            key, kw, kb = jax.random.split(key, 3)
            # Roughly matches nn.Linear's uniform(-1/sqrt(in), 1/sqrt(in)).
            bound = 1.0 / jnp.sqrt(jnp.float32(prev))
            w = jax.random.uniform(kw, (prev, h), jnp.float32, -bound, bound)
            b = jax.random.uniform(kb, (h,), jnp.float32, -bound, bound)
            self.weights.append(w)
            self.biases.append(b)
            prev = h

        # Kernel-side parameters: biases as (1, N) rows; final layer zero-padded
        # to a multiple of 128 output lanes (padding done once here, not per call)
        # so the kernel's single HBM store is lane-dense.  Padded columns produce
        # zeros and are sliced off outside the kernel.
        # NOTE: if this model is ever scaled up (large B*S / d_model), tile the
        # M axis with a "parallel" grid dim (v7x 2-TC sharding) and cast the
        # matmul inputs to bf16 — unnecessary at these toy sizes.
        self._k_weights = list(self.weights[:-1])
        self._k_biases = [b.reshape(1, -1) for b in self.biases[:-1]]
        n_pad = _round_up(pred_len, 128)
        w_last = self.weights[-1]
        b_last = self.biases[-1]
        w_pad = jnp.zeros((w_last.shape[0], n_pad), jnp.float32)
        w_pad = w_pad.at[:, :pred_len].set(w_last)
        b_pad = jnp.zeros((1, n_pad), jnp.float32)
        b_pad = b_pad.at[:, :pred_len].set(b_last.reshape(1, -1))
        self._k_weights.append(w_pad)
        self._k_biases.append(b_pad)

    def _mlp(self, x2d):
        y = fused_mlp(x2d, self._k_weights, self._k_biases)
        return y[:, : self.pred_len]

    def forecast(self, x_enc):
        """Full (B, S, pred_len) output, matching PyTorch Model.forecast."""
        B, S, D = x_enc.shape
        y = self._mlp(x_enc.reshape(B * S, D))
        return y.reshape(B, S, self.pred_len)

    def __call__(self, x_enc, x_mark_enc=None, x_dec=None, x_mark_dec=None, mask=None):
        if self.task_name in ('short_term_forecast_earnings',
                              't_short_term_forecast_earnings'):
            B, S, D = x_enc.shape
            # PyTorch's dec_out[:, -pred_len] indexes a single sequence position;
            # it silently requires pred_len <= S.
            assert 1 <= self.pred_len <= S, "pred_len must be in [1, seq_len]"
            # Hoist the position selection before the compute: every Linear acts
            # independently per position, so only (B, D) rows enter the kernel.
            x = x_enc[:, S - self.pred_len, :]
            return self._mlp(x)  # (B, pred_len)
        else:
            raise ValueError('Only forecast tasks implemented yet')


def reference_full(model, x_enc):
    x = x_enc
    for w, b in zip(model.weights, model.biases):
        x = jnp.einsum('bsk,kn->bsn', x, w) + b
    return x  # (B, S, pred_len)


def reference_forward(model, x_enc):
    return reference_full(model, x_enc)[:, -model.pred_len]


if __name__ == "__main__":
    key = jax.random.PRNGKey(0)
    k_model, k_x = jax.random.split(key)

    B, S, D = 2, 8, 32
    hidden_sizes = [32, 16]
    pred_len = 4

    model = PallasModel(
        task_name='short_term_forecast_earnings',
        d_model=D,
        hidden_sizes=hidden_sizes,
        pred_len=pred_len,
        key=k_model,
    )

    x_enc = jax.random.normal(k_x, (B, S, D), jnp.float32)

    # Forward (hoisted single-position path).
    out = model(x_enc, None, None, None)
    out = jax.block_until_ready(out)
    ref = reference_forward(model, x_enc)
    assert out.shape == (B, pred_len), out.shape
    assert jnp.allclose(out, ref, atol=1e-5, rtol=1e-5), "mismatch vs reference"

    # Full forecast path (sanity check that per-position fusion is exact).
    full = jax.block_until_ready(model.forecast(x_enc))
    full_ref = reference_full(model, x_enc)
    assert full.shape == (B, S, pred_len), full.shape
    assert jnp.allclose(full, full_ref, atol=1e-5, rtol=1e-5), "full-forecast mismatch"

    print("KERNEL_OK")
</pallas_src>

<mosaic_0001>
module attributes {stable_mosaic.version = 11 : i64} {
  func.func @_fused_mlp_kernel(%arg0: memref<2x32xf32, #tpu.memory_space<vmem>>, %arg1: memref<32x32xf32, #tpu.memory_space<vmem>>, %arg2: memref<1x32xf32, #tpu.memory_space<vmem>>, %arg3: memref<32x16xf32, #tpu.memory_space<vmem>>, %arg4: memref<1x16xf32, #tpu.memory_space<vmem>>, %arg5: memref<16x128xf32, #tpu.memory_space<vmem>>, %arg6: memref<1x128xf32, #tpu.memory_space<vmem>>, %arg7: memref<2x128xf32, #tpu.memory_space<vmem>>) attributes {dimension_semantics = [], scalar_prefetch = 0 : i64, scratch_operands = 0 : i64, tpu.core_type = #tpu.core_type<tc>} {
    %c0 = arith.constant 0 : index
    %c0_0 = arith.constant 0 : index
    %0 = vector.load %arg0[%c0, %c0_0] : memref<2x32xf32, #tpu.memory_space<vmem>>, vector<2x32xf32>
    %c0_1 = arith.constant 0 : index
    %c0_2 = arith.constant 0 : index
    %1 = vector.load %arg1[%c0_1, %c0_2] : memref<32x32xf32, #tpu.memory_space<vmem>>, vector<32x32xf32>
    %cst = arith.constant dense<0.000000e+00> : vector<2x32xf32>
    %2 = tpu.matmul %0, %1, %cst {dimension_numbers = #tpu.dot_dimension_numbers<[1], [0], [0], [1], [0, 0, 1, 1], [], []>} : vector<2x32xf32>, vector<32x32xf32>, vector<2x32xf32> -> vector<2x32xf32>
    %c0_3 = arith.constant 0 : index
    %c0_4 = arith.constant 0 : index
    %3 = vector.load %arg2[%c0_3, %c0_4] : memref<1x32xf32, #tpu.memory_space<vmem>>, vector<1x32xf32>
    %4 = vector.broadcast %3 : vector<1x32xf32> to vector<2x32xf32>
    %5 = arith.addf %2, %4 : vector<2x32xf32>
    %c0_5 = arith.constant 0 : index
    %c0_6 = arith.constant 0 : index
    %6 = vector.load %arg3[%c0_5, %c0_6] : memref<32x16xf32, #tpu.memory_space<vmem>>, vector<32x16xf32>
    %cst_7 = arith.constant dense<0.000000e+00> : vector<2x16xf32>
    %7 = tpu.matmul %5, %6, %cst_7 {dimension_numbers = #tpu.dot_dimension_numbers<[1], [0], [0], [1], [0, 0, 1, 1], [], []>} : vector<2x32xf32>, vector<32x16xf32>, vector<2x16xf32> -> vector<2x16xf32>
    %c0_8 = arith.constant 0 : index
    %c0_9 = arith.constant 0 : index
    %8 = vector.load %arg4[%c0_8, %c0_9] : memref<1x16xf32, #tpu.memory_space<vmem>>, vector<1x16xf32>
    %9 = vector.broadcast %8 : vector<1x16xf32> to vector<2x16xf32>
    %10 = arith.addf %7, %9 : vector<2x16xf32>
    %c0_10 = arith.constant 0 : index
    %c0_11 = arith.constant 0 : index
    %11 = vector.load %arg5[%c0_10, %c0_11] : memref<16x128xf32, #tpu.memory_space<vmem>>, vector<16x128xf32>
    %cst_12 = arith.constant dense<0.000000e+00> : vector<2x128xf32>
    %12 = tpu.matmul %10, %11, %cst_12 {dimension_numbers = #tpu.dot_dimension_numbers<[1], [0], [0], [1], [0, 0, 1, 1], [], []>} : vector<2x16xf32>, vector<16x128xf32>, vector<2x128xf32> -> vector<2x128xf32>
    %c0_13 = arith.constant 0 : index
    %c0_14 = arith.constant 0 : index
    %13 = vector.load %arg6[%c0_13, %c0_14] : memref<1x128xf32, #tpu.memory_space<vmem>>, vector<1x128xf32>
    %14 = vector.broadcast %13 : vector<1x128xf32> to vector<2x128xf32>
    %15 = arith.addf %12, %14 : vector<2x128xf32>
    %c0_15 = arith.constant 0 : index
    %c0_16 = arith.constant 0 : index
    %16 = vector.load %arg7[%c0_15, %c0_16] : memref<2x128xf32, #tpu.memory_space<vmem>>, vector<2x128xf32>
    tpu.vector_store %arg7[%c0_15, %c0_16], %15 {strides = array<i32>} : memref<2x128xf32, #tpu.memory_space<vmem>>, vector<2x128xf32>,
    return
  }
}

</mosaic_0001>

<bundles_post_ra>
// kernel: tpu_custom_call.1
= control target key start
LH: loop header
LB: loop body
LE: loop exit
PB: predicated region body
PF: predicated region fallthrough
CT: control target
= control target key end

     0   :  { %12 = vsyncpa [#allocation3], 0  ;;  %s498_s0 = inlined_call_operand.hbm [shape: f32[2,32], index: 0, kind: input, shape index: {}]   ;;  %s499_s1 = inlined_call_operand.vmem [shape: f32[32,32], index: 1, kind: input, shape index: {}]   ;;  %s500_s2 = inlined_call_operand.vmem [shape: f32[1,32], index: 2, kind: input, shape index: {}]   ;;  %s501_s3 = inlined_call_operand.vmem [shape: f32[32,16], index: 3, kind: input, shape index: {}]   ;;  %s502_s4 = inlined_call_operand.vmem [shape: f32[1,16], index: 4, kind: input, shape index: {}]   ;;  %s503_s5 = inlined_call_operand.vmem [shape: f32[16,128], index: 5, kind: input, shape index: {}]   ;;  %s504_s6 = inlined_call_operand.vmem [shape: f32[1,128], index: 6, kind: input, shape index: {}]   ;;  %s505_s7 = inlined_call_operand.hbm [shape: f32[2,128], index: 7, kind: output, shape index: {}]  }
   0x1   :  { %13 = vsyncpa [#allocation4], 0  ;;  %s404_s24 = smov [#allocation2]  }
   0x2   :  { %s20_s25 = sshll.u32 %s404_s24, 4  ;;  %s21_s25 = int_to_ptr.vmem [resolvable:$true] %s20_s25 }
   0x3   :  { %s368_s26 = scalar_lea.vmem %s21_s25, 32  ;;  %p373_p1 = scmp.lt.s32.totalorder %s21_s25, %s21_s25 }
   0x4   :  { %p369_p0 = scmp.ne.s32.totalorder %s21_s25, %s368_s26  ;;  %p374_p2 = scmp.lt.s32.totalorder %s368_s26, %s368_s26 }
   0x6   :  { %p375_p3 = por %p374_p2, %p373_p1 }
   0x8   :  { %p376_p4 = pnand %p375_p3, %p369_p0 }
   0xa   :  { %379 = shalt.err (!%p376_p4)
}
   0xb   :  { %23 = dma.hbm_to_vmem [thread:$0]  %s498_s0, 32, %s21_s25, [#allocation3]  }
   0xc   :  { %400 = dma.done.wait [#allocation3], 32  }
   0xd   :  { %401 = vsyncadd [#allocation3], 4294967264  ;;  %v405_v0 = vmov 0.0   ;;  %vm406_vm0 = vmmov 0   ;;  %v43_v1 = vld [vmem:[%s499_s1 + $0x18] sm:$0xff]  ;;  %v42_v2 = vld [vmem:[%s499_s1 + $0x10] sm:$0xff] }
   0xe   :  { %327 = vmatprep.subr.mxu0 %v405_v0  ;;  %335 = vmatprep.mubr.msk.f32.mxu0 %vm406_vm0, %v405_v0  ;;  %v128_v3 = vld [vmem:[%s501_s3 + $0x18] sm:$0xff]  ;;  %v41_v4 = vld [vmem:[%s499_s1 + $0x8] sm:$0xff]  ;;  %v127_v5 = vld [vmem:[%s501_s3 + $0x10] sm:$0xff]  ;;  %vm51_vm1 = vcmask 261120   ;;  %vm218_vm2 = vcmask 130048   ;;  %s407_s28 = smov [#allocation5]  }
   0xf   :  { %338 = vmatprep.subr.mxu1 %v405_v0  ;;  %346 = vmatprep.mubr.msk.f32.mxu1 %vm406_vm0, %v405_v0  ;;  %v40_v6 = vld [vmem:[%s499_s1] sm:$0xff]  ;;  %v126_v8 = vld [vmem:[%s501_s3 + $0x8] sm:$0xff]  ;;  %s299_s29 = sshll.u32 %s407_s28, 4  ;;  %s300_s29 = int_to_ptr.vmem [resolvable:$true] %s299_s29 }
  0x10   :  { %328 = vmatpush3.msra.mxu0 %v43_v1  ;;  %339 = vmatpush3.msra.mxu1 %v128_v3  ;;  %v39_v7 = vld [vmem:[#allocation2] sm:$0x3]  ;;  %v210_v10 = vld [vmem:[%s503_s5 + $0x8] sm:$0xff]  ;;  %p385_p6 = scmp.lt.s32.totalorder %s300_s29, %s300_s29 }
  0x11   :  { %329 = vmatprep.subr.mxu0 %v405_v0  ;;  %340 = vmatprep.subr.mxu1 %v405_v0  ;;  %v125_v9 = vld [vmem:[%s501_s3] sm:$0xff] }
  0x12   :  { %330 = vmatpush3.msra.mxu0 %v42_v2  ;;  %341 = vmatpush3.msra.mxu1 %v127_v5  ;;  %v308_v11 = vld [vmem:[%s500_s2] ss:$0 sm:$0xff] }
  0x13   :  { %331 = vmatprep.subr.mxu0 %v405_v0  ;;  %342 = vmatprep.subr.mxu1 %v405_v0  ;;  %v209_v15 = vld [vmem:[%s503_s5] sm:$0xff]  ;;  %s380_s5 = scalar_lea.vmem %s300_s29, 32 }
  0x14   :  { %332 = vmatpush3.msra.mxu0 %v41_v4  ;;  %343 = vmatpush3.msra.mxu1 %v126_v8  ;;  %v310_v16 = vld [vmem:[%s502_s4] ss:$0 sm:$0xff]  ;;  %p381_p5 = scmp.ne.s32.totalorder %s300_s29, %s380_s5  ;;  %p386_p7 = scmp.lt.s32.totalorder %s380_s5, %s380_s5 }
  0x15   :  { %333 = vmatprep.subr.mxu0 %v405_v0  ;;  %344 = vmatprep.subr.mxu1 %v405_v0  ;;  %v312_v20 = vld [vmem:[%s504_s6] ss:$0 sm:$0xff] }
  0x16   :  { %334 = vmatpush3.msra.mxu0 %v40_v6  ;;  %345 = vmatpush3.msra.mxu1 %v125_v9  ;;  %p387_p8 = por %p386_p7, %p385_p6 }
  0x17   :  { %336 = vmatmul.mubr.msk.f32.vlgmr.msra.gmra.mxu0 %vm51_vm1, %v39_v7  ;;  %349 = vmatprep.subr.mxu0 %v405_v0 }
  0x18   :  { %353 = vmatprep.mubr.msk.f32.mxu0 %vm406_vm0, %v405_v0  ;;  %350 = vmatpush3.msra.mxu0 %v210_v10  ;;  %p388_p9 = pnand %p387_p8, %p381_p5 }
  0x19   :  { %351 = vmatprep.subr.mxu0 %v405_v0 }
  0x1a   :  { %352 = vmatpush3.msra.mxu0 %v209_v15 }
  0xd7   :  { %v121_v12 = vpop.f32.mrf.mxu0 }
  0xd8   :  { %v122_v13 = vadd.f32 %v308_v11, %v121_v12 }
  0xd9   :  { %v337_v14 = vpop.f32.mrf.mxu0 }
  0xda   :  { %347 = vmatmul.mubr.msk.f32.vlgmr.msra.gmra.mxu1 %vm51_vm1, %v122_v13 }
 0x19a   :  { %v205_v17 = vpop.f32.mrf.mxu1 }
 0x19b   :  { %v206_v18 = vadd.f32 %v310_v16, %v205_v17 }
 0x19c   :  { %v348_v19 = vpop.f32.mrf.mxu1 }
 0x19d   :  { %354 = vmatmul.mubr.msk.f32.vlgmr.msra.gmra.mxu0 %vm218_vm2, %v206_v18 }
 0x25d   :  { %v288_v21 = vpop.f32.mrf.mxu0 }
 0x25e   :  { %v289_v22 = vadd.f32 %v312_v20, %v288_v21 }
 0x25f   :  { %v355_v23 = vpop.f32.mrf.mxu0 }
 0x260   :  { %292 = vst [vmem:[#allocation5] sm:$0x3] %v289_v22 }
 0x261   :  { %391 = shalt.err (!%p388_p9)
}
 0x262   :  { %302 = dma.vmem_to_hbm [thread:$0]  %s300_s29, 32, %s505_s7, [#allocation4]  }
 0x263   :  { %402 = dma.done.wait [#allocation4], 32  }
 0x264   :  { %403 = vsyncadd [#allocation4], 4294967264 }
 0x265   :  { %306 = vsyncpa [#allocation3], 1 }
 0x266   :  { %307 = vsyncpa [#allocation4], 1 }

</bundles_post_ra>
